<compile_context>
chip_gen: v6e
topology: v6e:2x2x1
jax: 0.10.0
libtpu: 0.0.40
codegen_flags: <defaults>
</compile_context>

<pallas_src>
import functools

import jax
import jax.numpy as jnp
from jax.experimental import pallas as pl
from jax.experimental.pallas import tpu as pltpu


DEPTH = 3
NEG_SLOPE = 0.01          # nn.LeakyReLU() default
_TILE_CAP = 4096          # max rows per grid step (multiple of 8)
_SPLIT_THRESHOLD = 256    # above this, ensure >= 2 grid steps (v7x dual-TC)
_XLA_FALLBACK_B = 128     # below this, plain-JAX path beats pallas_call fixed cost


def _leaky_relu(v):
    return jnp.where(v >= 0, v, NEG_SLOPE * v)


def mlpbase_kernel(x_ref, w0_ref, w12_ref, b_ref, head_ref, out_ref):
    """Fused actor+critic trunk + value head -> single lane-dense output slab.

    x_ref    : [TB, num_inputs]   (f32 or bf16)
    w0_ref   : [num_inputs, 2H]   actor|critic layer-0 weights, lane-concatenated
    w12_ref  : [depth-1, 2H, 2H]  block-diagonal (actor top-left / critic bottom-right)
    b_ref    : [depth, 2H]        per-layer actor|critic biases (always f32)
    head_ref : [2H+1, H+1]        rows 0..2H-1 = [[I_H, 0], [0, clw]]; row 2H = bias row
    out_ref  : [TB, H+1]          lanes 0..H-1 = hidden_actor, lane H = value
    """
    H2 = w0_ref.shape[-1]
    cdt = w0_ref.dtype  # MXU input dtype (f32 or bf16); accumulation is always f32

    x = x_ref[...].astype(cdt)

    # Layer 0: both trunks in one matmul -> [TB, 2H] (actor half | critic half).
    h = _leaky_relu(
        jnp.dot(x, w0_ref[...], preferred_element_type=jnp.float32) + b_ref[0:1, :]
    )

    # Layers 1..depth-1: block-diagonal weights keep both trunks in one matmul.
    for d in range(w12_ref.shape[0]):
        h = _leaky_relu(
            jnp.dot(h.astype(cdt), w12_ref[d], preferred_element_type=jnp.float32)
            + b_ref[d + 1:d + 2, :]
        )

    # Merged head: one tiny matmul selects the actor lanes (identity block) and
    # computes value = hc @ clw + clb into lane H -- one lane-dense store, no
    # (TB,1) masked-store stream and no XLU cross-lane reduce.
    out = (
        jnp.dot(h.astype(cdt), head_ref[0:H2, :], preferred_element_type=jnp.float32)
        + head_ref[H2:H2 + 1, :].astype(jnp.float32)
    )
    out_ref[...] = out.astype(out_ref.dtype)


def init_mlpbase_params(key, num_inputs, hidden_size, depth=DEPTH):
    """Deterministic Kaiming-uniform weights (bound = sqrt(6/fan_in)), zero biases.

    Weight layout: [in_features, out_features] (transposed vs. PyTorch nn.Linear).
    Bias layout: [1, out_features].
    NOTE: exact parity with a trained PyTorch checkpoint must come from imported
    weights; the forward math here matches the module exactly.
    """
    def kaiming_uniform(k, fan_in, fan_out):
        bound = jnp.sqrt(6.0 / fan_in)
        return jax.random.uniform(k, (fan_in, fan_out), jnp.float32, -bound, bound)

    keys = jax.random.split(key, 2 * depth + 1)
    params = {"actor": [], "critic": []}
    for branch, koff in (("actor", 0), ("critic", depth)):
        in_dim = num_inputs
        for d in range(depth):
            w = kaiming_uniform(keys[koff + d], in_dim, hidden_size)
            b = jnp.zeros((1, hidden_size), jnp.float32)
            params[branch].append((w, b))
            in_dim = hidden_size
    params["critic_linear"] = (
        kaiming_uniform(keys[-1], hidden_size, 1),
        jnp.zeros((1, 1), jnp.float32),
    )
    return params


def _pack_params(params, io_dtype):
    """Pack per-layer actor/critic params into 4 contiguous slabs."""
    actor = params["actor"]
    critic = params["critic"]
    depth = len(actor)
    H = actor[0][0].shape[1]

    # Layer 0: [num_inputs, 2H]
    w0 = jnp.concatenate([actor[0][0], critic[0][0]], axis=1)

    # Layers 1..depth-1: block-diagonal [2H, 2H]
    z = jnp.zeros((H, H), jnp.float32)
    w12 = jnp.stack(
        [jnp.block([[actor[d][0], z], [z, critic[d][0]]]) for d in range(1, depth)],
        axis=0,
    )

    # Biases: [depth, 2H]  (always f32 -- added onto f32 accumulation)
    biases = jnp.concatenate(
        [jnp.concatenate([actor[d][1], critic[d][1]], axis=1) for d in range(depth)],
        axis=0,
    )

    # Merged head: [2H+1, H+1].  Rows 0..2H-1 = [[I_H, 0], [0, clw]]; row 2H = bias row
    # with clb in lane H.
    clw, clb = params["critic_linear"]  # clw: [H, 1], clb: [1, 1]
    proj_top = jnp.concatenate([jnp.eye(H, dtype=jnp.float32),
                                jnp.zeros((H, 1), jnp.float32)], axis=1)   # [H, H+1]
    proj_bot = jnp.concatenate([jnp.zeros((H, H), jnp.float32), clw], axis=1)  # [H, H+1]
    head_bias = jnp.zeros((1, H + 1), jnp.float32).at[0, H].set(clb[0, 0])     # [1, H+1]
    head = jnp.concatenate([proj_top, proj_bot, head_bias], axis=0)            # [2H+1, H+1]

    return (w0.astype(io_dtype), w12.astype(io_dtype), biases, head.astype(io_dtype))


def _forward_trunks_xla(x, params):
    """Plain-JAX path for tiny batches (pallas_call fixed cost not worth it)."""
    def run(h, layers):
        for w, b in layers:
            h = _leaky_relu(h @ w + b)
        return h

    ha = run(x, params["actor"])
    hc = run(x, params["critic"])
    clw, clb = params["critic_linear"]
    return hc @ clw + clb, ha


def _batch_tile(B):
    """Rows per grid step: big tiles, multiple of 8, >= 2 steps when B is large."""
    if B <= _SPLIT_THRESHOLD:
        return B
    half = -(-B // 2)               # ceil(B / 2) -> at least 2 grid steps
    half = -(-half // 8) * 8        # round up to a multiple of 8
    return min(_TILE_CAP, half)


@functools.partial(jax.jit, static_argnames=("use_bf16", "force_pallas"))
def mlpbase_forward(x, rnn_hxs, masks, params, use_bf16=False, force_pallas=False):
    """Pallas-backed MLPBase.forward (non-recurrent). masks/rnn_hxs pass through."""
    del masks  # unused on the non-recurrent path
    B, num_inputs = x.shape
    H = params["actor"][0][0].shape[1]
    H2 = 2 * H
    depth = len(params["actor"])

    if B < _XLA_FALLBACK_B and not force_pallas:
        value, hidden_actor = _forward_trunks_xla(x, params)
        return value, hidden_actor, rnn_hxs

    io_dtype = jnp.bfloat16 if use_bf16 else jnp.float32
    w0, w12, biases, head = _pack_params(params, io_dtype)

    tb = _batch_tile(B)
    grid = (pl.cdiv(B, tb),)

    resident2 = lambda i: (0, 0)
    out = pl.pallas_call(
        mlpbase_kernel,
        out_shape=jax.ShapeDtypeStruct((B, H + 1), io_dtype),
        grid=grid,
        in_specs=[
            pl.BlockSpec((tb, num_inputs), lambda i: (i, 0)),        # x: tiled over batch
            pl.BlockSpec((num_inputs, H2), resident2),               # w0: VMEM-resident
            pl.BlockSpec((depth - 1, H2, H2), lambda i: (0, 0, 0)),  # w12: VMEM-resident
            pl.BlockSpec((depth, H2), resident2),                    # biases: resident
            pl.BlockSpec((H2 + 1, H + 1), resident2),                # head: resident
        ],
        out_specs=pl.BlockSpec((tb, H + 1), lambda i: (i, 0)),       # merged actor|value
        compiler_params=pltpu.CompilerParams(
            dimension_semantics=("parallel",),  # batch axis shardable across v7x's 2 TCs
        ),
    )(x.astype(io_dtype), w0, w12, biases, head)

    hidden_actor = out[:, :H].astype(jnp.float32)
    value = out[:, H:H + 1].astype(jnp.float32)
    return value, hidden_actor, rnn_hxs


def mlpbase_forward_ref(x, rnn_hxs, masks, params):
    """Plain-JAX reference for verification."""
    del masks
    value, hidden_actor = _forward_trunks_xla(x, params)
    return value, hidden_actor, rnn_hxs


if __name__ == "__main__":
    # Small shapes consistent with the module: batch=8, num_inputs=16, hidden=32, depth=3.
    batch, num_inputs, hidden_size = 8, 16, 32

    key = jax.random.PRNGKey(0)
    k_x, k_params, k_big = jax.random.split(key, 3)

    x = jax.random.normal(k_x, (batch, num_inputs), jnp.float32)
    # recurrent=False => recurrent_hidden_state_size == 1
    rnn_hxs = jnp.zeros((batch, 1), jnp.float32)
    masks = jnp.ones((batch, 1), jnp.float32)

    params = init_mlpbase_params(k_params, num_inputs, hidden_size)

    # 1) Demo batch: force the Pallas path so the kernel itself is exercised.
    value, hidden_actor, rnn_hxs_out = mlpbase_forward(
        x, rnn_hxs, masks, params, force_pallas=True)
    jax.block_until_ready((value, hidden_actor, rnn_hxs_out))

    v_ref, a_ref, _ = mlpbase_forward_ref(x, rnn_hxs, masks, params)
    assert value.shape == (batch, 1)
    assert hidden_actor.shape == (batch, hidden_size)
    assert jnp.allclose(value, v_ref, atol=1e-5, rtol=1e-5)
    assert jnp.allclose(hidden_actor, a_ref, atol=1e-5, rtol=1e-5)

    # 2) Regression: batch not a multiple of the tile (partial last grid step,
    #    masked out-of-bounds output writes).
    B_big = 1000
    xb = jax.random.normal(k_big, (B_big, num_inputs), jnp.float32)
    hb = jnp.zeros((B_big, 1), jnp.float32)
    mb = jnp.ones((B_big, 1), jnp.float32)
    vb, ab, _ = mlpbase_forward(xb, hb, mb, params)
    jax.block_until_ready((vb, ab))
    vb_ref, ab_ref, _ = mlpbase_forward_ref(xb, hb, mb, params)
    assert jnp.allclose(vb, vb_ref, atol=1e-5, rtol=1e-5)
    assert jnp.allclose(ab, ab_ref, atol=1e-5, rtol=1e-5)

    # 3) Optional bf16 I/O path (HBM-bandwidth optimization) -- loose tolerance.
    vbf, abf, _ = mlpbase_forward(xb, hb, mb, params, use_bf16=True)
    jax.block_until_ready((vbf, abf))
    assert jnp.allclose(vbf, vb_ref, atol=1e-1, rtol=1e-1)
    assert jnp.allclose(abf, ab_ref, atol=1e-1, rtol=1e-1)

    print("KERNEL_OK")
</pallas_src>

<mosaic_0001>
module attributes {stable_mosaic.version = 11 : i64} {
  func.func @mlpbase_kernel(%arg0: i32, %arg1: memref<8x16xf32, #tpu.memory_space<vmem>>, %arg2: memref<16x64xf32, #tpu.memory_space<vmem>>, %arg3: memref<2x64x64xf32, #tpu.memory_space<vmem>>, %arg4: memref<3x64xf32, #tpu.memory_space<vmem>>, %arg5: memref<65x33xf32, #tpu.memory_space<vmem>>, %arg6: memref<8x33xf32, #tpu.memory_space<vmem>>) attributes {dimension_semantics = [#tpu.dimension_semantics<parallel>], iteration_bounds = array<i64: 1>, scalar_prefetch = 0 : i64, scratch_operands = 0 : i64, tpu.core_type = #tpu.core_type<tc>, window_params = [{transform_indices = @transform_0, window_bounds = array<i64: 8, 16>}, {pipeline_mode = #tpu.pipeline_mode<synchronous>, transform_indices = @transform_1, window_bounds = array<i64: 16, 64>}, {pipeline_mode = #tpu.pipeline_mode<synchronous>, transform_indices = @transform_2, window_bounds = array<i64: 2, 64, 64>}, {pipeline_mode = #tpu.pipeline_mode<synchronous>, transform_indices = @transform_3, window_bounds = array<i64: 3, 64>}, {pipeline_mode = #tpu.pipeline_mode<synchronous>, transform_indices = @transform_4, window_bounds = array<i64: 65, 33>}, {transform_indices = @transform_5, window_bounds = array<i64: 8, 33>}]} {
    %c0 = arith.constant 0 : index
    %c0_0 = arith.constant 0 : index
    %0 = vector.load %arg1[%c0, %c0_0] : memref<8x16xf32, #tpu.memory_space<vmem>>, vector<8x16xf32>
    %c0_1 = arith.constant 0 : index
    %c0_2 = arith.constant 0 : index
    %1 = vector.load %arg2[%c0_1, %c0_2] : memref<16x64xf32, #tpu.memory_space<vmem>>, vector<16x64xf32>
    %cst = arith.constant dense<0.000000e+00> : vector<8x64xf32>
    %2 = tpu.matmul %0, %1, %cst {dimension_numbers = #tpu.dot_dimension_numbers<[1], [0], [0], [1], [0, 0, 1, 1], [], []>} : vector<8x16xf32>, vector<16x64xf32>, vector<8x64xf32> -> vector<8x64xf32>
    %c0_3 = arith.constant 0 : index
    %c0_4 = arith.constant 0 : index
    %3 = vector.load %arg4[%c0_3, %c0_4] : memref<3x64xf32, #tpu.memory_space<vmem>>, vector<1x64xf32>
    %4 = vector.broadcast %3 : vector<1x64xf32> to vector<8x64xf32>
    %5 = arith.addf %2, %4 : vector<8x64xf32>
    %cst_5 = arith.constant 0.000000e+00 : f32
    %6 = vector.broadcast %cst_5 : f32 to vector<8x64xf32>
    %7 = arith.cmpf oge, %5, %6 : vector<8x64xf32>
    %cst_6 = arith.constant 0.00999999977 : f32
    %8 = vector.broadcast %cst_6 : f32 to vector<8x64xf32>
    %9 = arith.mulf %8, %5 : vector<8x64xf32>
    %10 = arith.select %7, %5, %9 : vector<8x64xi1>, vector<8x64xf32>
    %c0_7 = arith.constant 0 : index
    %c0_8 = arith.constant 0 : index
    %c0_9 = arith.constant 0 : index
    %11 = vector.load %arg3[%c0_7, %c0_8, %c0_9] : memref<2x64x64xf32, #tpu.memory_space<vmem>>, vector<1x64x64xf32>
    %12 = vector.shape_cast %11 : vector<1x64x64xf32> to vector<64x64xf32>
    %cst_10 = arith.constant dense<0.000000e+00> : vector<8x64xf32>
    %13 = tpu.matmul %10, %12, %cst_10 {dimension_numbers = #tpu.dot_dimension_numbers<[1], [0], [0], [1], [0, 0, 1, 1], [], []>} : vector<8x64xf32>, vector<64x64xf32>, vector<8x64xf32> -> vector<8x64xf32>
    %c1 = arith.constant 1 : index
    %c0_11 = arith.constant 0 : index
    %14 = vector.load %arg4[%c1, %c0_11] : memref<3x64xf32, #tpu.memory_space<vmem>>, vector<1x64xf32>
    %15 = vector.broadcast %14 : vector<1x64xf32> to vector<8x64xf32>
    %16 = arith.addf %13, %15 : vector<8x64xf32>
    %cst_12 = arith.constant 0.000000e+00 : f32
    %17 = vector.broadcast %cst_12 : f32 to vector<8x64xf32>
    %18 = arith.cmpf oge, %16, %17 : vector<8x64xf32>
    %cst_13 = arith.constant 0.00999999977 : f32
    %19 = vector.broadcast %cst_13 : f32 to vector<8x64xf32>
    %20 = arith.mulf %19, %16 : vector<8x64xf32>
    %21 = arith.select %18, %16, %20 : vector<8x64xi1>, vector<8x64xf32>
    %c1_14 = arith.constant 1 : index
    %c0_15 = arith.constant 0 : index
    %c0_16 = arith.constant 0 : index
    %22 = vector.load %arg3[%c1_14, %c0_15, %c0_16] : memref<2x64x64xf32, #tpu.memory_space<vmem>>, vector<1x64x64xf32>
    %23 = vector.shape_cast %22 : vector<1x64x64xf32> to vector<64x64xf32>
    %cst_17 = arith.constant dense<0.000000e+00> : vector<8x64xf32>
    %24 = tpu.matmul %21, %23, %cst_17 {dimension_numbers = #tpu.dot_dimension_numbers<[1], [0], [0], [1], [0, 0, 1, 1], [], []>} : vector<8x64xf32>, vector<64x64xf32>, vector<8x64xf32> -> vector<8x64xf32>
    %c2 = arith.constant 2 : index
    %c0_18 = arith.constant 0 : index
    %25 = vector.load %arg4[%c2, %c0_18] : memref<3x64xf32, #tpu.memory_space<vmem>>, vector<1x64xf32>
    %26 = vector.broadcast %25 : vector<1x64xf32> to vector<8x64xf32>
    %27 = arith.addf %24, %26 : vector<8x64xf32>
    %cst_19 = arith.constant 0.000000e+00 : f32
    %28 = vector.broadcast %cst_19 : f32 to vector<8x64xf32>
    %29 = arith.cmpf oge, %27, %28 : vector<8x64xf32>
    %cst_20 = arith.constant 0.00999999977 : f32
    %30 = vector.broadcast %cst_20 : f32 to vector<8x64xf32>
    %31 = arith.mulf %30, %27 : vector<8x64xf32>
    %32 = arith.select %29, %27, %31 : vector<8x64xi1>, vector<8x64xf32>
    %c0_21 = arith.constant 0 : index
    %c0_22 = arith.constant 0 : index
    %33 = vector.load %arg5[%c0_21, %c0_22] : memref<65x33xf32, #tpu.memory_space<vmem>>, vector<64x33xf32>
    %cst_23 = arith.constant dense<0.000000e+00> : vector<8x33xf32>
    %34 = tpu.matmul %32, %33, %cst_23 {dimension_numbers = #tpu.dot_dimension_numbers<[1], [0], [0], [1], [0, 0, 1, 1], [], []>} : vector<8x64xf32>, vector<64x33xf32>, vector<8x33xf32> -> vector<8x33xf32>
    %c64 = arith.constant 64 : index
    %c0_24 = arith.constant 0 : index
    %35 = vector.load %arg5[%c64, %c0_24] : memref<65x33xf32, #tpu.memory_space<vmem>>, vector<1x33xf32>
    %36 = vector.broadcast %35 : vector<1x33xf32> to vector<8x33xf32>
    %37 = arith.addf %34, %36 : vector<8x33xf32>
    %c0_25 = arith.constant 0 : index
    %c0_26 = arith.constant 0 : index
    %38 = vector.load %arg6[%c0_25, %c0_26] : memref<8x33xf32, #tpu.memory_space<vmem>>, vector<8x33xf32>
    tpu.vector_store %arg6[%c0_25, %c0_26], %37 {strides = array<i32>} : memref<8x33xf32, #tpu.memory_space<vmem>>, vector<8x33xf32>,
    return
  }
  func.func @transform_0(%arg0: i32) -> (i32, i32) {
    %c0_i32 = arith.constant 0 : i32
    %c0_i32_0 = arith.constant 0 : i32
    return %arg0, %c0_i32 : i32, i32
  }
  func.func @transform_1(%arg0: i32) -> (i32, i32) {
    %c0_i32 = arith.constant 0 : i32
    %c0_i32_0 = arith.constant 0 : i32
    %c0_i32_1 = arith.constant 0 : i32
    return %c0_i32, %c0_i32_0 : i32, i32
  }
  func.func @transform_2(%arg0: i32) -> (i32, i32, i32) {
    %c0_i32 = arith.constant 0 : i32
    %c0_i32_0 = arith.constant 0 : i32
    %c0_i32_1 = arith.constant 0 : i32
    %c0_i32_2 = arith.constant 0 : i32
    return %c0_i32, %c0_i32_0, %c0_i32_1 : i32, i32, i32
  }
  func.func @transform_3(%arg0: i32) -> (i32, i32) {
    %c0_i32 = arith.constant 0 : i32
    %c0_i32_0 = arith.constant 0 : i32
    %c0_i32_1 = arith.constant 0 : i32
    return %c0_i32, %c0_i32_0 : i32, i32
  }
  func.func @transform_4(%arg0: i32) -> (i32, i32) {
    %c0_i32 = arith.constant 0 : i32
    %c0_i32_0 = arith.constant 0 : i32
    %c0_i32_1 = arith.constant 0 : i32
    return %c0_i32, %c0_i32_0 : i32, i32
  }
  func.func @transform_5(%arg0: i32) -> (i32, i32) {
    %c0_i32 = arith.constant 0 : i32
    %c0_i32_0 = arith.constant 0 : i32
    return %arg0, %c0_i32 : i32, i32
  }
}

</mosaic_0001>

<bundles_post_ra>
// kernel: mlpbase_forward.1
= control target key start
LH: loop header
LB: loop body
LE: loop exit
PB: predicated region body
PF: predicated region fallthrough
CT: control target
= control target key end

     0   :  { %v489_v0 = vmov 0.0   ;;  %vm490_vm0 = vmmov 0   ;;  %vm28_vm1 = vcmask 130048   ;;  %vm118_vm3 = vcmask 523264   ;;  %s654_s1 = inlined_call_operand.vmem [shape: f32[16,64], index: 1, kind: input, shape index: {}]   ;;  %s655_s0 = inlined_call_operand.vmem [shape: f32[8,16], index: 0, kind: input, shape index: {}]   ;;  %s656_s2 = inlined_call_operand.vmem [shape: f32[2,64,64], index: 2, kind: input, shape index: {}]   ;;  %s657_s3 = inlined_call_operand.vmem [shape: f32[3,64], index: 3, kind: input, shape index: {}]   ;;  %s658_s4 = inlined_call_operand.vmem [shape: f32[65,33], index: 4, kind: input, shape index: {}]   ;;  %s659_s5 = inlined_call_operand.vmem [shape: f32[8,33], index: 5, kind: output, shape index: {}]  }
   0x1   :  { %423 = vmatprep.subr.mxu0 %v489_v0  ;;  %v22_v1 = vld [vmem:[%s654_s1 + $0x8] sm:$0xff]  ;;  %v21_v2 = vld [vmem:[%s654_s1] sm:$0xff]  ;;  %427 = vmatprep.mubr.msk.f32.mxu0 %vm490_vm0, %v489_v0  ;;  %v112_v4 = vld [vmem:[%s656_s2 + $0x38] sm:$0xff]  ;;  %vm371_vm6 = vcmask 269312  }
   0x2   :  { %424 = vmatpush3.msra.mxu0 %v22_v1  ;;  %v20_v3 = vld [vmem:[%s655_s0] sm:$0xff]  ;;  %430 = vmatprep.subr.mxu1 %v489_v0  ;;  %v111_v5 = vld [vmem:[%s656_s2 + $0x30] sm:$0xff]  ;;  %v110_v6 = vld [vmem:[%s656_s2 + $0x28] sm:$0xff] }
   0x3   :  { %425 = vmatprep.subr.mxu0 %v489_v0  ;;  %431 = vmatpush3.msra.mxu1 %v112_v4  ;;  %v109_v7 = vld [vmem:[%s656_s2 + $0x20] sm:$0xff]  ;;  %v108_v8 = vld [vmem:[%s656_s2 + $0x18] sm:$0xff]  ;;  %v107_v9 = vld [vmem:[%s656_s2 + $0x10] sm:$0xff] }
   0x4   :  { %426 = vmatpush3.msra.mxu0 %v21_v2  ;;  %432 = vmatprep.subr.mxu1 %v489_v0  ;;  %v106_v10 = vld [vmem:[%s656_s2 + $0x8] sm:$0xff]  ;;  %v105_v11 = vld [vmem:[%s656_s2] sm:$0xff]  ;;  %v388_v12 = vld [vmem:[%s656_s2 + $0x78] sm:$0xff] }
   0x5   :  { %428 = vmatmul.mubr.msk.f32.vlgmr.msra.gmra.mxu0 %vm28_vm1, %v20_v3  ;;  %433 = vmatpush3.msra.mxu1 %v111_v5  ;;  %v387_v13 = vld [vmem:[%s656_s2 + $0x70] sm:$0xff]  ;;  %v386_v14 = vld [vmem:[%s656_s2 + $0x68] sm:$0xff]  ;;  %v385_v15 = vld [vmem:[%s656_s2 + $0x60] sm:$0xff] }
   0x6   :  { %434 = vmatprep.subr.mxu1 %v489_v0  ;;  %446 = vmatprep.mubr.msk.f32.mxu1 %vm490_vm0, %v489_v0  ;;  %v384_v16 = vld [vmem:[%s656_s2 + $0x58] sm:$0xff]  ;;  %v377_v17 = vld [vmem:[%s657_s3] ss:$0 sm:$0xff]  ;;  %v383_v23 = vld [vmem:[%s656_s2 + $0x50] sm:$0xff] }
   0x7   :  { %435 = vmatpush3.msra.mxu1 %v110_v6  ;;  %449 = vmatprep.subr.mxu0 %v489_v0  ;;  %v382_v24 = vld [vmem:[%s656_s2 + $0x48] sm:$0xff]  ;;  %v381_v25 = vld [vmem:[%s656_s2 + $0x40] sm:$0xff]  ;;  %v292_v26 = vld [vmem:[%s658_s4 + $0x38] sm:$0xff] }
   0x8   :  { %436 = vmatprep.subr.mxu1 %v489_v0  ;;  %465 = vmatprep.mubr.msk.f32.mxu0 %vm490_vm0, %v489_v0  ;;  %v291_v27 = vld [vmem:[%s658_s4 + $0x30] sm:$0xff]  ;;  %v290_v28 = vld [vmem:[%s658_s4 + $0x28] sm:$0xff]  ;;  %v289_v29 = vld [vmem:[%s658_s4 + $0x20] sm:$0xff] }
   0x9   :  { %437 = vmatpush3.msra.mxu1 %v109_v7  ;;  %450 = vmatpush3.msra.mxu0 %v388_v12  ;;  %v288_v30 = vld [vmem:[%s658_s4 + $0x18] sm:$0xff]  ;;  %v379_v31 = vld [vmem:[%s657_s3 + $0x1] ss:$0 sm:$0xff]  ;;  %v287_v37 = vld [vmem:[%s658_s4 + $0x10] sm:$0xff] }
   0xa   :  { %438 = vmatprep.subr.mxu1 %v489_v0  ;;  %451 = vmatprep.subr.mxu0 %v489_v0  ;;  %v286_v38 = vld [vmem:[%s658_s4 + $0x8] sm:$0xff]  ;;  %v285_v39 = vld [vmem:[%s658_s4] sm:$0xff] }
   0xb   :  { %439 = vmatpush3.msra.mxu1 %v108_v8  ;;  %452 = vmatpush3.msra.mxu0 %v387_v13  ;;  %v389_v40 = vld [vmem:[%s657_s3 + $0x2] ss:$0 sm:$0xff]  ;;  %v391_v46 = vld [vmem:[%s658_s4 + $0x40] ss:$0 sm:$0xff] }
   0xc   :  { %440 = vmatprep.subr.mxu1 %v489_v0  ;;  %453 = vmatprep.subr.mxu0 %v489_v0 }
   0xd   :  { %441 = vmatpush3.msra.mxu1 %v107_v9  ;;  %454 = vmatpush3.msra.mxu0 %v386_v14 }
   0xe   :  { %442 = vmatprep.subr.mxu1 %v489_v0  ;;  %455 = vmatprep.subr.mxu0 %v489_v0 }
   0xf   :  { %443 = vmatpush3.msra.mxu1 %v106_v10  ;;  %456 = vmatpush3.msra.mxu0 %v385_v15 }
  0x10   :  { %444 = vmatprep.subr.mxu1 %v489_v0  ;;  %457 = vmatprep.subr.mxu0 %v489_v0 }
  0x11   :  { %445 = vmatpush3.msra.mxu1 %v105_v11  ;;  %458 = vmatpush3.msra.mxu0 %v384_v16 }
  0x12   :  { %468 = vmatprep.subr.mxu1 %v489_v0  ;;  %459 = vmatprep.subr.mxu0 %v489_v0 }
  0x13   :  { %460 = vmatpush3.msra.mxu0 %v383_v23 }
  0x14   :  { %461 = vmatprep.subr.mxu0 %v489_v0 }
  0x15   :  { %462 = vmatpush3.msra.mxu0 %v382_v24 }
  0x16   :  { %463 = vmatprep.subr.mxu0 %v489_v0 }
  0x17   :  { %464 = vmatpush3.msra.mxu0 %v381_v25 }
  0xc5   :  { %v98_v18 = vpop.f32.mrf.mxu0 }
  0xc6   :  { %v99_v19 = vadd.f32 %v377_v17, %v98_v18 }
  0xc7   :  { %v429_v20 = vpop.f32.mrf.mxu0 }
  0xc8   :  { %vm102_vm2 = vcmp.ge.f32.partialorder %v99_v19, 0.0  ;;  %v103_v21 = vmul.f32 0.01, %v99_v19 }
  0xca   :  { %v104_v22 = vsel %vm102_vm2, %v99_v19, %v103_v21 }
  0xcb   :  { %447 = vmatmul.mubr.msk.f32.vlgmr.msra.gmra.mxu1 %vm118_vm3, %v104_v22 }
  0xcc   :  { %484 = vmatprep.mubr.msk.f32.mxu1 %vm490_vm0, %v489_v0  ;;  %469 = vmatpush3.msra.mxu1 %v292_v26 }
  0xcd   :  { %470 = vmatprep.subr.mxu1 %v489_v0 }
  0xce   :  { %471 = vmatpush3.msra.mxu1 %v291_v27 }
  0xcf   :  { %472 = vmatprep.subr.mxu1 %v489_v0 }
  0xd0   :  { %473 = vmatpush3.msra.mxu1 %v290_v28 }
  0xd1   :  { %474 = vmatprep.subr.mxu1 %v489_v0 }
  0xd2   :  { %475 = vmatpush3.msra.mxu1 %v289_v29 }
  0xd3   :  { %476 = vmatprep.subr.mxu1 %v489_v0 }
  0xd4   :  { %477 = vmatpush3.msra.mxu1 %v288_v30 }
  0xd5   :  { %478 = vmatprep.subr.mxu1 %v489_v0 }
  0xd6   :  { %479 = vmatpush3.msra.mxu1 %v287_v37 }
  0xd7   :  { %480 = vmatprep.subr.mxu1 %v489_v0 }
  0xd8   :  { %481 = vmatpush3.msra.mxu1 %v286_v38 }
  0xd9   :  { %482 = vmatprep.subr.mxu1 %v489_v0 }
  0xda   :  { %483 = vmatpush3.msra.mxu1 %v285_v39 }
 0x18b   :  { %v188_v32 = vpop.f32.mrf.mxu1 }
 0x18c   :  { %v189_v33 = vadd.f32 %v379_v31, %v188_v32 }
 0x18d   :  { %v448_v34 = vpop.f32.mrf.mxu1 }
 0x18e   :  { %vm192_vm4 = vcmp.ge.f32.partialorder %v189_v33, 0.0  ;;  %v193_v35 = vmul.f32 0.01, %v189_v33 }
 0x190   :  { %v194_v36 = vsel %vm192_vm4, %v189_v33, %v193_v35 }
 0x191   :  { %466 = vmatmul.mubr.msk.f32.vlgmr.msra.gmra.mxu0 %vm118_vm3, %v194_v36 }
 0x251   :  { %v278_v41 = vpop.f32.mrf.mxu0 }
 0x252   :  { %v279_v42 = vadd.f32 %v389_v40, %v278_v41 }
 0x253   :  { %v467_v43 = vpop.f32.mrf.mxu0 }
 0x254   :  { %vm282_vm5 = vcmp.ge.f32.partialorder %v279_v42, 0.0  ;;  %v283_v44 = vmul.f32 0.01, %v279_v42 }
 0x256   :  { %v284_v45 = vsel %vm282_vm5, %v279_v42, %v283_v44 }
 0x257   :  { %485 = vmatmul.mubr.msk.f32.vlgmr.msra.gmra.mxu1 %vm118_vm3, %v284_v45 }
 0x317   :  { %v367_v47 = vpop.f32.mrf.mxu1 }
 0x318   :  { %v368_v48 = vadd.f32 %v391_v46, %v367_v47 }
 0x319   :  { %v486_v49 = vpop.f32.mrf.mxu1 }
 0x31a   :  { %372 = vst.msk [vmem:[%s659_s5] sm:$0xff] %vm371_vm6, %v368_v48 }

</bundles_post_ra>
